<compile_context>
chip_gen: v5e
topology: v5e:2x2
jax: 0.10.0
libtpu: 0.0.40
codegen_flags: <defaults>
</compile_context>

<pallas_src>
import jax
import jax.numpy as jnp
from jax.experimental import pallas as pl
from jax.experimental.pallas import tpu as pltpu


def _mlp_kernel(x_ref, w1_ref, b1_ref, w2_ref, b2_ref, o_ref):
    # x_ref: (C, tc) -- channels on sublanes, spatial columns on lanes.
    x = x_ref[...].astype(jnp.float32)
    h = jnp.dot(w1_ref[...], x, preferred_element_type=jnp.float32)   # (hid, tc)
    h = jnp.maximum(h + b1_ref[...], 0.0)                             # bias (hid,1) bcast + ReLU
    # dropout(p=0.15) in eval mode == identity
    h = jnp.dot(w2_ref[...], h, preferred_element_type=jnp.float32)   # (hid, tc)
    h = h + b2_ref[...]
    o_ref[...] = (h + x).astype(o_ref.dtype)                          # residual


def mlp_pallas(x_nchw, w1, b1, w2, b2, *, tile_cols=1024):
    """1x1-conv MLP with residual, operating directly on NCHW.

    x_nchw: (N, C, H, W)
    w1:     (hidden, C)      == Conv2d weight (out, in, 1, 1) squeezed
    b1:     (hidden,)
    w2:     (hidden, hidden)
    b2:     (hidden,)
    """
    N, C, H, W = x_nchw.shape
    hid = w1.shape[0]
    assert C == hid, "residual requires input_dim == hidden_dim"

    HW = H * W
    # Zero-cost view: NCHW -> (N, C, H*W); spatial axis lands on lanes.
    x3 = x_nchw.reshape(N, C, HW)

    # Column tile: big (amortizes ~0.35us/step grid overhead) and either a
    # multiple of 128 (lane-dense) or the full spatial extent.
    tc = min(tile_cols, HW)
    if tc != HW and tc % 128 != 0:
        tc = max(128, (tc // 128) * 128)
    n_col_tiles = pl.cdiv(HW, tc)   # partial last block handled by Pallas

    b1_2d = b1.reshape(hid, 1)
    b2_2d = b2.reshape(hid, 1)

    grid = (N, n_col_tiles)
    out = pl.pallas_call(
        _mlp_kernel,
        out_shape=jax.ShapeDtypeStruct((N, C, HW), x_nchw.dtype),
        grid_spec=pltpu.PrefetchScalarGridSpec(
            num_scalar_prefetch=0,
            grid=grid,
            in_specs=[
                # activation tile: (C, tc), batch dim squeezed
                pl.BlockSpec((None, C, tc), lambda n, j: (n, 0, j)),
                # weights / biases resident across the whole grid
                pl.BlockSpec((hid, C), lambda n, j: (0, 0)),
                pl.BlockSpec((hid, 1), lambda n, j: (0, 0)),
                pl.BlockSpec((hid, hid), lambda n, j: (0, 0)),
                pl.BlockSpec((hid, 1), lambda n, j: (0, 0)),
            ],
            out_specs=pl.BlockSpec((None, C, tc), lambda n, j: (n, 0, j)),
        ),
        compiler_params=pltpu.CompilerParams(
            dimension_semantics=("parallel", "parallel")),
    )(x3, w1, b1_2d, w2, b2_2d)

    return out.reshape(N, C, H, W)


def mlp_reference(x_nchw, w1, b1, w2, b2):
    N, C, H, W = x_nchw.shape
    x = x_nchw.reshape(N, C, H * W).astype(jnp.float32)
    h = jnp.maximum(jnp.einsum("oc,ncs->nos", w1, x) + b1[None, :, None], 0.0)
    h = jnp.einsum("oc,ncs->nos", w2, h) + b2[None, :, None]
    h = h + x
    return h.reshape(N, C, H, W).astype(x_nchw.dtype)


if __name__ == "__main__":
    key = jax.random.PRNGKey(0)
    N, C, H, W = 2, 32, 16, 16        # input_dim == hidden_dim == 32
    hidden = C

    k_x, k_w1, k_b1, k_w2, k_b2 = jax.random.split(key, 5)
    x = jax.random.normal(k_x, (N, C, H, W), dtype=jnp.float32)
    # Conv2d(1x1) weights (out, in, 1, 1) squeezed -> (out, in); used as-is.
    w1 = jax.random.normal(k_w1, (hidden, C), dtype=jnp.float32) * 0.1
    b1 = jax.random.normal(k_b1, (hidden,), dtype=jnp.float32) * 0.1
    w2 = jax.random.normal(k_w2, (hidden, hidden), dtype=jnp.float32) * 0.1
    b2 = jax.random.normal(k_b2, (hidden,), dtype=jnp.float32) * 0.1

    out = mlp_pallas(x, w1, b1, w2, b2)
    out = jax.block_until_ready(out)

    ref = mlp_reference(x, w1, b1, w2, b2)
    assert out.shape == (N, C, H, W)
    assert jnp.allclose(out, ref, atol=1e-4, rtol=1e-4)

    print("KERNEL_OK")
</pallas_src>

<mosaic_0001>
module attributes {stable_mosaic.version = 11 : i64} {
  func.func @_mlp_kernel(%arg0: i32, %arg1: i32, %arg2: memref<1x32x256xf32, #tpu.memory_space<vmem>>, %arg3: memref<32x32xf32, #tpu.memory_space<vmem>>, %arg4: memref<32x1xf32, #tpu.memory_space<vmem>>, %arg5: memref<32x32xf32, #tpu.memory_space<vmem>>, %arg6: memref<32x1xf32, #tpu.memory_space<vmem>>, %arg7: memref<1x32x256xf32, #tpu.memory_space<vmem>>) attributes {dimension_semantics = [#tpu.dimension_semantics<parallel>, #tpu.dimension_semantics<parallel>], iteration_bounds = array<i64: 2, 1>, scalar_prefetch = 0 : i64, scratch_operands = 0 : i64, tpu.core_type = #tpu.core_type<tc>, window_params = [{transform_indices = @transform_0, window_bounds = array<i64: 1, 32, 256>}, {pipeline_mode = #tpu.pipeline_mode<synchronous>, transform_indices = @transform_1, window_bounds = array<i64: 32, 32>}, {pipeline_mode = #tpu.pipeline_mode<synchronous>, transform_indices = @transform_2, window_bounds = array<i64: 32, 1>}, {pipeline_mode = #tpu.pipeline_mode<synchronous>, transform_indices = @transform_3, window_bounds = array<i64: 32, 32>}, {pipeline_mode = #tpu.pipeline_mode<synchronous>, transform_indices = @transform_4, window_bounds = array<i64: 32, 1>}, {transform_indices = @transform_5, window_bounds = array<i64: 1, 32, 256>}]} {
    %c0 = arith.constant 0 : index
    %c0_0 = arith.constant 0 : index
    %c0_1 = arith.constant 0 : index
    %0 = vector.load %arg2[%c0, %c0_0, %c0_1] : memref<1x32x256xf32, #tpu.memory_space<vmem>>, vector<1x32x256xf32>
    %1 = vector.shape_cast %0 : vector<1x32x256xf32> to vector<32x256xf32>
    %c0_2 = arith.constant 0 : index
    %c0_3 = arith.constant 0 : index
    %2 = vector.load %arg3[%c0_2, %c0_3] : memref<32x32xf32, #tpu.memory_space<vmem>>, vector<32x32xf32>
    %cst = arith.constant dense<0.000000e+00> : vector<32x256xf32>
    %3 = tpu.matmul %2, %1, %cst {dimension_numbers = #tpu.dot_dimension_numbers<[1], [0], [0], [1], [0, 0, 1, 1], [], []>} : vector<32x32xf32>, vector<32x256xf32>, vector<32x256xf32> -> vector<32x256xf32>
    %c0_4 = arith.constant 0 : index
    %c0_5 = arith.constant 0 : index
    %4 = vector.load %arg4[%c0_4, %c0_5] : memref<32x1xf32, #tpu.memory_space<vmem>>, vector<32x1xf32>
    %5 = vector.broadcast %4 : vector<32x1xf32> to vector<32x256xf32>
    %6 = arith.addf %3, %5 : vector<32x256xf32>
    %cst_6 = arith.constant 0.000000e+00 : f32
    %7 = vector.broadcast %cst_6 : f32 to vector<32x256xf32>
    %8 = arith.maximumf %6, %7 : vector<32x256xf32>
    %c0_7 = arith.constant 0 : index
    %c0_8 = arith.constant 0 : index
    %9 = vector.load %arg5[%c0_7, %c0_8] : memref<32x32xf32, #tpu.memory_space<vmem>>, vector<32x32xf32>
    %cst_9 = arith.constant dense<0.000000e+00> : vector<32x256xf32>
    %10 = tpu.matmul %9, %8, %cst_9 {dimension_numbers = #tpu.dot_dimension_numbers<[1], [0], [0], [1], [0, 0, 1, 1], [], []>} : vector<32x32xf32>, vector<32x256xf32>, vector<32x256xf32> -> vector<32x256xf32>
    %c0_10 = arith.constant 0 : index
    %c0_11 = arith.constant 0 : index
    %11 = vector.load %arg6[%c0_10, %c0_11] : memref<32x1xf32, #tpu.memory_space<vmem>>, vector<32x1xf32>
    %12 = vector.broadcast %11 : vector<32x1xf32> to vector<32x256xf32>
    %13 = arith.addf %10, %12 : vector<32x256xf32>
    %14 = arith.addf %13, %1 : vector<32x256xf32>
    %c0_12 = arith.constant 0 : index
    %c0_13 = arith.constant 0 : index
    %c0_14 = arith.constant 0 : index
    %15 = vector.load %arg7[%c0_12, %c0_13, %c0_14] : memref<1x32x256xf32, #tpu.memory_space<vmem>>, vector<1x32x256xf32>
    %16 = vector.shape_cast %15 : vector<1x32x256xf32> to vector<32x256xf32>
    %17 = vector.shape_cast %14 : vector<32x256xf32> to vector<1x32x256xf32>
    tpu.vector_store %arg7[%c0_12, %c0_13, %c0_14], %17 {strides = array<i32>} : memref<1x32x256xf32, #tpu.memory_space<vmem>>, vector<1x32x256xf32>,
    return
  }
  func.func @transform_0(%arg0: i32, %arg1: i32) -> (i32, i32, i32) {
    %c0_i32 = arith.constant 0 : i32
    %c0_i32_0 = arith.constant 0 : i32
    return %arg0, %c0_i32, %arg1 : i32, i32, i32
  }
  func.func @transform_1(%arg0: i32, %arg1: i32) -> (i32, i32) {
    %c0_i32 = arith.constant 0 : i32
    %c0_i32_0 = arith.constant 0 : i32
    %c0_i32_1 = arith.constant 0 : i32
    return %c0_i32, %c0_i32_0 : i32, i32
  }
  func.func @transform_2(%arg0: i32, %arg1: i32) -> (i32, i32) {
    %c0_i32 = arith.constant 0 : i32
    %c0_i32_0 = arith.constant 0 : i32
    %c0_i32_1 = arith.constant 0 : i32
    return %c0_i32, %c0_i32_0 : i32, i32
  }
  func.func @transform_3(%arg0: i32, %arg1: i32) -> (i32, i32) {
    %c0_i32 = arith.constant 0 : i32
    %c0_i32_0 = arith.constant 0 : i32
    %c0_i32_1 = arith.constant 0 : i32
    return %c0_i32, %c0_i32_0 : i32, i32
  }
  func.func @transform_4(%arg0: i32, %arg1: i32) -> (i32, i32) {
    %c0_i32 = arith.constant 0 : i32
    %c0_i32_0 = arith.constant 0 : i32
    %c0_i32_1 = arith.constant 0 : i32
    return %c0_i32, %c0_i32_0 : i32, i32
  }
  func.func @transform_5(%arg0: i32, %arg1: i32) -> (i32, i32, i32) {
    %c0_i32 = arith.constant 0 : i32
    %c0_i32_0 = arith.constant 0 : i32
    return %arg0, %c0_i32, %arg1 : i32, i32, i32
  }
}

</mosaic_0001>

<bundles_post_ra>
// kernel: tpu_custom_call.1
= control target key start
LH: loop header
LB: loop body
LE: loop exit
PB: predicated region body
PF: predicated region fallthrough
CT: control target
= control target key end

     0   :  { %10 = vsyncpa [#allocation3], 0  ;;  %s1082_s0 = inlined_call_operand.hbm [shape: f32[2,32,256], index: 0, kind: input, shape index: {}]   ;;  %s1083_s1 = inlined_call_operand.vmem [shape: f32[32,32], index: 1, kind: input, shape index: {}]   ;;  %s1084_s2 = inlined_call_operand.vmem [shape: f32[32,1], index: 2, kind: input, shape index: {}]   ;;  %s1085_s3 = inlined_call_operand.vmem [shape: f32[32,32], index: 3, kind: input, shape index: {}]   ;;  %s1086_s4 = inlined_call_operand.vmem [shape: f32[32,1], index: 4, kind: input, shape index: {}]   ;;  %s1087_s5 = inlined_call_operand.hbm [shape: f32[2,32,256], index: 5, kind: output, shape index: {}]  }
   0x1   :  { %12 = vsyncpa [#allocation3 + $0x1], 0 }
   0x2   :  { %13 = vsyncpa [#allocation4], 0 }
   0x3   :  { %15 = vsyncpa [#allocation4 + $0x1], 0  ;;  %s851_s18 = smov 0   ;;  %s853_s19 = smov 0  }
   0x4   :  { %s855_s20 = smov 0   ;;  %s857_s21 = smov 0  }
   0x5   :  { %s859_s22 = smov 0   ;;  %s861_s23 = smov 0  }
   0x6 LB: > { %s599_s24 = sadd.s32 4294967295, %s814_s23   ;;  %s600_s25 = sadd.s32 4294967294, %s814_s23   ;;  %s814_s23 = sphi %s861_s23, %s21_s23   ;;  %s810_s22 = sphi %s859_s22, %s1096_s22   ;;  %s806_s21 = sphi %s857_s21, %s1095_s21   ;;  %s802_s20 = sphi %s855_s20, %s1094_s20   ;;  %s798_s19 = sphi %s853_s19, %s1093_s19   ;;  %s794_s18 = sphi %s851_s18, %s1092_s18  }
   0x7   : > { %s33_s26 = sadd.s32 1, %s810_s22  ;;  %s42_s27 = sadd.s32 1, %s802_s20 }
   0x8   : > { %p35_p0 = scmp.ge.s32.totalorder %s33_s26, 2  ;;  %p49_p1 = scmp.ne.s32.totalorder %s802_s20, %s798_s19 }
   0x9   : > { %p50_p2 = scmp.eq.s32.totalorder %s814_s23, 0  ;;  %p55_p3 = scmp.ne.s32.totalorder %s798_s19, %s794_s18 }
   0xa   : > { %s1098_s26 = smov (%p35_p0, %s33_s26), 0  ;;  %p56_p5 = scmp.eq.s32.totalorder %s599_s24, 0 }
   0xb   : > { %p892_p4 = por %p50_p2, %p49_p1  ;;  %s37_s29 = ssub.s32 %s810_s22, %s1098_s26 }
   0xc   : > { %p165_p6 = scmp.eq.s32.totalorder %s599_s24, 1  ;;  %p40_p7 = scmp.eq.s32.totalorder %s37_s29, 0 }
   0xd   : > { %p898_p8 = por %p56_p5, %p55_p3  ;;  %p171_p10 = scmp.eq.s32.totalorder %s600_s25, 1 }
   0xe   : > { %p902_p9 = por %p165_p6, %p49_p1  ;;  %p602_p12 = scmp.ge.s32.totalorder %s814_s23, 2 }
   0xf   : > { %s907_s7 = scalar_select %p40_p7, %s802_s20, %s42_s27  }
  0x10   : > { %p909_p11 = por %p171_p10, %p55_p3  ;;  %p644_p13 = scmp.lt.s32.totalorder %s814_s23, 2 }
  0x11   : > { %s203_s9 = sand.u32 1, %s802_s20   ;;  %s630_s11 = sshll.u32 %s810_s22, 6 }
  0x12   : > { %s603_s10 = sshll.u32 %s203_s9, 6  ;;  %s214_s14 = scalar_lea.hbm %s1082_s0, %s630_s11 }
  0x13   : > { %s207_s15 = scalar_lea.vmem [#allocation2], %s603_s10  ;;  %s215_s17 = sshll.u32 %s214_s14, 4  ;;  %s216_s17 = int_to_ptr.hbm [resolvable:$true] %s215_s17 }
  0x14   : > { %s217_s16 = sshll.u32 %s207_s15, 4  ;;  %p637_p0 = pnand %p644_p13, %p892_p4  ;;  %s218_s16 = int_to_ptr.vmem [resolvable:$true] %s217_s16 }
  0x15   : > { %p606_p1 = scmp.ge.s32.totalorder %s814_s23, 1  ;;  %s204_s24 = scalar_lea.sflag [#allocation3], %s203_s9 }
  0x16   : > { %s816_s25 = smov 256   ;;  %s817_s27 = smov 16  }
  0x17   : > { %639 = dma.hbm_to_vmem [thread:$0]  (!%p637_p0), %s216_s17, 1024, %s218_s16, %s204_s24, %s816_s25, %s816_s25, %s817_s27  }
  0x18   : > { %p225_p2 = scmp.lt.s32.totalorder %s814_s23, 3 }
  0x1a   : > { %p226_p3 = pnand %p606_p1, %p225_p2 }
  0x1b   : > { %s925_s29 = sand.u32 (!%p226_p3), 1, %s798_s19  }
  0x1c   : > { %229 = sbr.rel (%p226_p3) target bundleno = 369 (0x171), region = 40  ;;  %s607_s10 = sshll.u32 (!%p226_p3), %s925_s29, 6 }
  0x1d   : > { %s232_s11 = scalar_lea.sflag (!%p226_p3), [#allocation3], %s925_s29  ;;  %s235_s28 = scalar_lea.vmem (!%p226_p3), [#allocation2], %s607_s10 }
  0x21   : > { %785 = dma.done.wait (%p898_p8), %s232_s11, 1024  }
  0x22   : > { %787 = vsyncadd (%p898_p8), %s232_s11, 4294966272  ;;  %v818_v0 = vmov 0   ;;  %v935_v1 = vld [vmem:[%s235_s28 + $0x30] sm:$0xff]  ;;  %v937_v2 = vld [vmem:[%s235_s28 + $0x38] sm:$0xff]  ;;  %vm301_vm0 = vcmask 261120   ;;  %s1027_s16 = scalar_lea.vmem [#allocation5], %s607_s10 }
  0x23   : > { %700 = vset.pattern.permute.xlu1 %v818_v0  ;;  %699 = vset.pattern.permute.xlu0 %v818_v0  ;;  %v939_v3 = vld [vmem:[%s235_s28 + $0x20] sm:$0xff]  ;;  %v943_v4 = vld [vmem:[%s235_s28 + $0x28] sm:$0xff]  ;;  %v945_v5 = vld [vmem:[%s235_s28 + $0x10] sm:$0xff]  ;;  %s631_s10 = sshll.u32 %s806_s21, 6  ;;  %s509_s27 = sshll.u32 %s1027_s16, 4  ;;  %s510_s27 = int_to_ptr.vmem [resolvable:$true] %s509_s27 }
  0x24   : > { %701 = vset.pattern.permute.xlu2 %v818_v0  ;;  %326 = vmatpush.msra.mxu0 %v935_v1  ;;  %v947_v6 = vld [vmem:[%s235_s28 + $0x18] sm:$0xff]  ;;  %v278_v7 = vld [vmem:[%s1084_s2 + $0x8] sm:$0xff]  ;;  %v954_v8 = vld [vmem:[%s235_s28] sm:$0xff]  ;;  %s508_s25 = scalar_lea.hbm %s1087_s5, %s631_s10  ;;  %s495_s21 = scalar_lea.sflag [#allocation4], %s925_s29 }
  0x25   : > { %355 = vmatpush.msra.mxu1 %v937_v2  ;;  %v956_v9 = vld [vmem:[%s235_s28 + $0x8] sm:$0xff]  ;;  %288 = vperm.xlu1 %700, %v278_v7   ;;  %v280_v10 = vld [vmem:[%s1084_s2 + $0x18] sm:$0xff]  ;;  %v273_v11 = vld [vmem:[%s1083_s1] sm:$0xff]  ;;  %s511_s11 = sshll.u32 %s508_s25, 4  ;;  %s752_s13 = scalar_lea.hbm %s1087_s5, 128  ;;  %s512_s11 = int_to_ptr.hbm [resolvable:$true] %s511_s11 }
  0x26   : > { %327 = vmatpush.msra.mxu0 %v939_v3  ;;  %298 = vperm.xlu0 %699, %v280_v10   ;;  %v277_v12 = vld [vmem:[%s1084_s2] sm:$0xff]  ;;  %v279_v13 = vld [vmem:[%s1084_s2 + $0x10] sm:$0xff]  ;;  %v274_v14 = vld [vmem:[%s1083_s1 + $0x8] sm:$0xff]  ;;  %s746_s28 = sshra.s32 %s512_s11, 4  ;;  %s747_s28 = int_to_ptr.hbm [resolvable:$true] %s746_s28 }
  0x27   : > { %356 = vmatpush.msra.mxu1 %v943_v4  ;;  %v387_v15 = vld [vmem:[%s1086_s4 + $0x18] sm:$0xff]  ;;  %v386_v16 = vld [vmem:[%s1086_s4 + $0x10] sm:$0xff]  ;;  %v384_v39 = vld [vmem:[%s1086_s4] sm:$0xff]  ;;  %s748_s30 = scalar_lea.hbm %s747_s28, 64  ;;  %p753_p7 = scmp.lt.s32.totalorder %s747_s28, %s1087_s5 }
  0x28   : > { %328 = vmatpush.msra.mxu0 %v945_v5  ;;  %v275_v17 = vld [vmem:[%s1083_s1 + $0x10] sm:$0xff]  ;;  %v276_v18 = vld [vmem:[%s1083_s1 + $0x18] sm:$0xff]  ;;  %390 = vperm.xlu2 %701, %v384_v39   ;;  %v380_v48 = vld [vmem:[%s1085_s3] sm:$0xff]  ;;  %p749_p4 = scmp.ne.s32.totalorder %s747_s28, %s748_s30  ;;  %p754_p8 = scmp.lt.s32.totalorder %s752_s13, %s748_s30 }
  0x29   : > { %357 = vmatpush.msra.mxu1 %v947_v6  ;;  %v385_v49 = vld [vmem:[%s1086_s4 + $0x8] sm:$0xff]  ;;  %v382_v51 = vld [vmem:[%s1085_s3 + $0x10] sm:$0xff]  ;;  %v383_v52 = vld [vmem:[%s1085_s3 + $0x18] sm:$0xff] }
  0x2a   : > { %329 = vmatpush.msra.mxu0 %v954_v8  ;;  %v381_v50 = vld [vmem:[%s1085_s3 + $0x8] sm:$0xff]  ;;  %p750_p5 = pnand %p749_p4, %p902_p9  ;;  %p755_p10 = por %p754_p8, %p753_p7 }
  0x2b   : > { %358 = vmatpush.msra.mxu1 %v956_v9  ;;  %609 = vmatmul.msk.f32.vlgmr.msra.gmra.mxu0 %vm301_vm0, %v273_v11 }
  0x2c   : > { %613 = vmatmul.msk.f32.vlgmr.msra.gmra.mxu1 %vm301_vm0, %v273_v11  ;;  %p751_p6 = pneg %p750_p5 }
  0x2d   : > { %283 = vperm.xlu1 %700, %v277_v12  }
  0x2e   : > { %293 = vperm.xlu0 %699, %v279_v13   ;;  %p756_p13 = pnand %p755_p10, %p751_p6 }
  0x30   : > { %395 = vperm.xlu2 %701, %v385_v49  }
  0x33   : > { %610 = vmatmul.msk.f32.gmra.mxu0 %vm301_vm0, %v274_v14 }
  0x34   : > { %614 = vmatmul.msk.f32.gmra.mxu1 %vm301_vm0, %v274_v14 }
  0x35   : > { %405 = vperm.xlu1 %700, %v387_v15  }
  0x36   : > { %400 = vperm.xlu0 %699, %v386_v16  }
  0x3b   : > { %611 = vmatmul.msk.f32.gmra.mxu0 %vm301_vm0, %v275_v17 }
  0x3c   : > { %615 = vmatmul.msk.f32.gmra.mxu1 %vm301_vm0, %v275_v17 }
  0x43   : > { %612 = vmatmul.msk.f32.gmra.mxu0 %vm301_vm0, %v276_v18 }
  0x44   : > { %616 = vmatmul.msk.f32.gmra.mxu1 %vm301_vm0, %v276_v18 }
  0x82   : > { %v391_v53 = vpop.permute.xlu2 %390 }
  0x8a   : > { %v396_v60 = vpop.permute.xlu2 %395 }
  0x97   : > { %v289_v24 = vpop.permute.xlu1 %288 }
  0x98   : > { %v299_v23 = vpop.permute.xlu0 %298 }
  0x9f   : > { %v284_v34 = vpop.permute.xlu1 %283 }
  0xa0   : > { %v294_v27 = vpop.permute.xlu0 %293 }
  0xa8   : > { %v331_v19 = vpop.f32.mrf.mxu0 }
  0xa9   : > { %v360_v20 = vpop.f32.mrf.mxu1  ;;  %v332_v40 = vadd.f32 %v331_v19, %v284_v34 }
  0xaa   : > { %v361_v41 = vadd.f32 %v360_v20, %v284_v34 }
  0xab   : > { %v372_v46 = vmax.f32 %v332_v40, 0.0 }
  0xac   : > { %v373_v47 = vmax.f32 %v361_v41, 0.0 }
  0xb0   : > { %v334_v21 = vpop.f32.mrf.mxu0 }
  0xb1   : > { %v363_v22 = vpop.f32.mrf.mxu1  ;;  %v335_v35 = vadd.f32 %v334_v21, %v289_v24 }
  0xb2   : > { %v364_v36 = vadd.f32 %v363_v22, %v289_v24 }
  0xb3   : > { %v374_v44 = vmax.f32 %v335_v35, 0.0 }
  0xb4   : > { %v375_v45 = vmax.f32 %v364_v36, 0.0 }
  0xb8   : > { %v337_v25 = vpop.f32.mrf.mxu0 }
  0xb9   : > { %v366_v26 = vpop.f32.mrf.mxu1  ;;  %v338_v30 = vadd.f32 %v337_v25, %v294_v27 }
  0xba   : > { %v367_v31 = vadd.f32 %v366_v26, %v294_v27 }
  0xbb   : > { %v376_v42 = vmax.f32 %v338_v30, 0.0 }
  0xbc   : > { %v377_v43 = vmax.f32 %v367_v31, 0.0 }
  0xc0   : > { %v340_v28 = vpop.f32.mrf.mxu0 }
  0xc1   : > { %v369_v29 = vpop.f32.mrf.mxu1  ;;  %v341_v32 = vadd.f32 %v340_v28, %v299_v23 }
  0xc2   : > { %v370_v33 = vadd.f32 %v369_v29, %v299_v23 }
  0xc3   : > { %v378_v37 = vmax.f32 %v341_v32, 0.0 }
  0xc4   : > { %v379_v38 = vmax.f32 %v370_v33, 0.0 }
  0xc5   : > { %432 = vmatpush.msra.mxu2 %v378_v37 }
  0xc6   : > { %461 = vmatpush.msra.mxu3 %v379_v38 }
  0xc7   : > { %433 = vmatpush.msra.mxu2 %v376_v42 }
  0xc8   : > { %462 = vmatpush.msra.mxu3 %v377_v43 }
  0xc9   : > { %434 = vmatpush.msra.mxu2 %v374_v44 }
  0xca   : > { %463 = vmatpush.msra.mxu3 %v375_v45 }
  0xcb   : > { %435 = vmatpush.msra.mxu2 %v372_v46 }
  0xcc   : > { %464 = vmatpush.msra.mxu3 %v373_v47  ;;  %617 = vmatmul.msk.f32.vlgmr.msra.gmra.mxu2 %vm301_vm0, %v380_v48 }
  0xcd   : > { %621 = vmatmul.msk.f32.vlgmr.msra.gmra.mxu3 %vm301_vm0, %v380_v48 }
  0xd4   : > { %618 = vmatmul.msk.f32.gmra.mxu2 %vm301_vm0, %v381_v50 }
  0xd5   : > { %622 = vmatmul.msk.f32.gmra.mxu3 %vm301_vm0, %v381_v50 }
  0xdc   : > { %619 = vmatmul.msk.f32.gmra.mxu2 %vm301_vm0, %v382_v51 }
  0xdd   : > { %623 = vmatmul.msk.f32.gmra.mxu3 %vm301_vm0, %v382_v51 }
  0xe4   : > { %620 = vmatmul.msk.f32.gmra.mxu2 %vm301_vm0, %v383_v52 }
  0xe5   : > { %624 = vmatmul.msk.f32.gmra.mxu3 %vm301_vm0, %v383_v52 }
 0x14f   : > { %v437_v54 = vpop.f32.mrf.mxu2 }
 0x150   : > { %v466_v55 = vpop.f32.mrf.mxu3  ;;  %v438_v56 = vadd.f32 %v437_v54, %v391_v53 }
 0x151   : > { %v467_v57 = vadd.f32 %v466_v55, %v391_v53 }
 0x152   : > { %v478_v58 = vadd.f32 %v438_v56, %v954_v8 }
 0x153   : > { %v479_v59 = vadd.f32 %v467_v57, %v956_v9  ;;  %v401_v9 = vpop.permute.xlu0 %400 }
 0x154   : > { %486 = vst [vmem:[%s1027_s16] sm:$0xff] %v478_v58 }
 0x155   : > { %487 = vst [vmem:[%s1027_s16 + $0x8] sm:$0xff] %v479_v59 }
 0x157   : > { %v440_v61 = vpop.f32.mrf.mxu2 }
 0x158   : > { %v469_v62 = vpop.f32.mrf.mxu3  ;;  %v441_v63 = vadd.f32 %v440_v61, %v396_v60 }
 0x159   : > { %v470_v0 = vadd.f32 %v469_v62, %v396_v60 }
 0x15a   : > { %v480_v7 = vadd.f32 %v441_v63, %v945_v5  ;;  %v406_v5 = vpop.permute.xlu1 %405 }
 0x15b   : > { %v481_v8 = vadd.f32 %v470_v0, %v947_v6 }
 0x15c   : > { %488 = vst [vmem:[%s1027_s16 + $0x10] sm:$0xff] %v480_v7 }
 0x15d   : > { %489 = vst [vmem:[%s1027_s16 + $0x18] sm:$0xff] %v481_v8 }
 0x15f   : > { %v443_v10 = vpop.f32.mrf.mxu2 }
 0x160   : > { %v472_v11 = vpop.f32.mrf.mxu3  ;;  %v444_v12 = vadd.f32 %v443_v10, %v401_v9 }
 0x161   : > { %v473_v13 = vadd.f32 %v472_v11, %v401_v9 }
 0x162   : > { %v482_v14 = vadd.f32 %v444_v12, %v939_v3 }
 0x163   : > { %v483_v15 = vadd.f32 %v473_v13, %v943_v4 }
 0x164   : > { %490 = vst [vmem:[%s1027_s16 + $0x20] sm:$0xff] %v482_v14 }
 0x165   : > { %491 = vst [vmem:[%s1027_s16 + $0x28] sm:$0xff] %v483_v15 }
 0x167   : > { %v446_v6 = vpop.f32.mrf.mxu2 }
 0x168   : > { %v475_v16 = vpop.f32.mrf.mxu3  ;;  %v447_v17 = vadd.f32 %v446_v6, %v406_v5 }
 0x169   : > { %v476_v18 = vadd.f32 %v475_v16, %v406_v5 }
 0x16a   : > { %v484_v3 = vadd.f32 %v447_v17, %v935_v1 }
 0x16b   : > { %v485_v4 = vadd.f32 %v476_v18, %v937_v2 }
 0x16c   : > { %492 = vst [vmem:[%s1027_s16 + $0x30] sm:$0xff] %v484_v3 }
 0x16d   : > { %493 = vst [vmem:[%s1027_s16 + $0x38] sm:$0xff] %v485_v4 }
 0x16e   : > { %759 = shalt.err (!%p756_p13)
}
 0x16f   : > { %s819_s29 = smov 256   ;;  %s820_s16 = smov 16  }
 0x170   : > { %634 = dma.vmem_to_hbm [thread:$0]  (%p902_p9), %s510_s27, 1024, %s512_s11, %s495_s21, %s819_s29, %s819_s29, %s820_s16  }
 0x171 PF: > { %s526_s10 = sand.u32 1, %s794_s18   ;;  %p641_p0 = pnand %p602_p12, %p909_p11 }
 0x172   : > { %s527_s17 = scalar_lea.sflag [#allocation4], %s526_s10 }
 0x173   : > { %p642_p1 = pneg %p641_p0 }
 0x175   : > { %789 = dma.done.wait (%p642_p1), %s527_s17, 1024  }
 0x176   : > { %791 = vsyncadd (%p642_p1), %s527_s17, 4294966272  ;;  %s21_s23 = sadd.s32 1, %s814_s23   ;;  %s1092_s18 = smov %s798_s19 }
 0x177   : > { %p18_p2 = scmp.ge.s32.totalorder %s21_s23, 4   ;;  %s1093_s19 = smov %s802_s20 }
 0x178   : > { %s1094_s20 = smov %s907_s7  ;;  %s1095_s21 = smov %s810_s22 }
 0x179   : > { %s1096_s22 = smov %s1098_s26  ;;  %20 = sbr.rel (!%p18_p2) target bundleno = 6 (0x6), region = 85 }
 0x17e   :  { %533 = vsyncpa [#allocation3], 1 }
 0x17f   :  { %535 = vsyncpa [#allocation3 + $0x1], 1 }
 0x180   :  { %536 = vsyncpa [#allocation4], 1 }
 0x181   :  { %538 = vsyncpa [#allocation4 + $0x1], 1 }

</bundles_post_ra>
